<compile_context>
chip_gen: v5e
topology: v5e:2x2
jax: 0.10.0
libtpu: 0.0.40
codegen_flags: <defaults>
</compile_context>

<pallas_src>
import functools

import jax
import jax.numpy as jnp
from jax.experimental import pallas as pl
from jax.experimental.pallas import tpu as pltpu

CV_EMBED = 64
STRUCT_EMBED = 64
_PACK = 8                    # logical faces packed per physical (lane-dense) row
_ROW_ALIGN = 8 * _PACK       # logical rows aligned so packed rows are 8-aligned


def mesh_embed_kernel(n_ref, c_ref, wn_ref, wc_ref, b_ref, o_ref):
    """(tr, 24) @ (24, 512) + (tr, 24) @ (24, 512) + (1, 512) -> (tr, 512)."""
    acc = jnp.dot(n_ref[...], wn_ref[...], preferred_element_type=jnp.float32)
    acc = acc + jnp.dot(c_ref[...], wc_ref[...],
                        preferred_element_type=jnp.float32)
    o_ref[...] = (acc + b_ref[...]).astype(o_ref.dtype)


def init_linear(key, fan_in, fan_out, dtype=jnp.float32):
    """Deterministic nn.Linear-style init: U(-1/sqrt(fan_in), 1/sqrt(fan_in))."""
    kw, kb = jax.random.split(key)
    bound = 1.0 / (fan_in ** 0.5)
    w = jax.random.uniform(kw, (fan_in, fan_out), dtype, -bound, bound)
    b = jax.random.uniform(kb, (1, fan_out), dtype, -bound, bound)
    return w, b


def init_params(key):
    k1, k2, k3 = jax.random.split(key, 3)
    w_fk, b_fk = init_linear(k1, 6, CV_EMBED)                 # face_kernels Linear(6, 64)
    w_nl, b_nl = init_linear(k2, 3, CV_EMBED)                 # normal_embedding Linear(3, 64)
    w_em, b_em = init_linear(k3, 2 * CV_EMBED, STRUCT_EMBED)  # embedding Linear(128, 64)
    return dict(w_fk=w_fk, b_fk=b_fk, w_nl=w_nl, b_nl=b_nl, w_em=w_em, b_em=b_em)


def _fold_params(params):
    """Fold the three Linear layers into two (3,64) weights + one (1,64) bias,
    then duplicate block-diagonally for the _PACK-row lane packing."""
    w_fk, b_fk = params["w_fk"], params["b_fk"]
    w_nl, b_nl = params["w_nl"], params["b_nl"]
    w_em, b_em = params["w_em"], params["b_em"]

    w_fk_sum = w_fk[:3] + w_fk[3:]                              # (3, 64)
    w_n = w_nl @ w_em[:CV_EMBED]                                # (3, 64)
    w_c = w_fk_sum @ w_em[CV_EMBED:]                            # (3, 64)
    b = b_nl @ w_em[:CV_EMBED] + b_fk @ w_em[CV_EMBED:] + b_em  # (1, 64)

    eye = jnp.eye(_PACK, dtype=w_n.dtype)
    wn_big = jnp.kron(eye, w_n)                   # (3*_PACK, 64*_PACK) blockdiag
    wc_big = jnp.kron(eye, w_c)                   # (3*_PACK, 64*_PACK) blockdiag
    b_big = jnp.tile(b, (1, _PACK))               # (1, 64*_PACK)
    return wn_big, wc_big, b_big


@functools.partial(jax.jit, static_argnames=("tile_rows",))
def mesh_structural_embedding(params, face_normals, triangles, triangles_center,
                              tile_rows: int = 2048):
    """tile_rows is in *packed* rows (= _PACK logical mesh faces per row)."""
    B, F, _ = face_normals.shape
    N = B * F
    dtype = face_normals.dtype

    # TODO(synk): the algebraic weight folding is exact only for the default
    # config (single Linear per expansion stage, no ReLU / residual blocks);
    # other configs need an unfused multi-matmul kernel.
    wn_big, wc_big, b_big = _fold_params(params)

    # Two separate row inputs -> no concatenated feature array is ever written
    # to HBM. normals is a pure (bitcast) reshape of the input buffer;
    # cv_mean is a small fused reduce (exploits linearity of the mean).
    normals = face_normals.reshape(N, 3).astype(jnp.float32)
    cv_mean = (jnp.mean(triangles, axis=2) - triangles_center)
    cv_mean = cv_mean.reshape(N, 3).astype(jnp.float32)

    pad = (-N) % _ROW_ALIGN            # <= 63 rows; zero when N is 64-aligned
    if pad:
        normals = jnp.pad(normals, ((0, pad), (0, 0)))
        cv_mean = jnp.pad(cv_mean, ((0, pad), (0, 0)))
    np_rows = N + pad
    nr = np_rows // _PACK              # packed rows, multiple of 8
    in_w = 3 * _PACK                   # 24 lanes per row input
    out_w = STRUCT_EMBED * _PACK       # 512 lanes -> unmasked stores
    n2 = normals.reshape(nr, in_w)     # free row-major pack
    c2 = cv_mean.reshape(nr, in_w)

    # Tile: ~4 MiB of output per step, but keep the grid >= 8 steps so the
    # pipeline (and both v7x TensorCores) stay busy for medium meshes.
    tr = max(8, min(tile_rows, pl.cdiv(nr, 8)))
    tr = ((tr + 7) // 8) * 8
    tr = min(tr, nr)
    grid = pl.cdiv(nr, tr)

    flops = 4 * nr * in_w * out_w                          # two MXU matmuls
    bytes_accessed = 4 * (2 * nr * in_w                    # row inputs
                          + 2 * in_w * out_w + out_w       # folded weights/bias
                          + nr * out_w)                    # output
    cost = pl.CostEstimate(flops=flops, transcendentals=0,
                           bytes_accessed=bytes_accessed)

    out = pl.pallas_call(
        mesh_embed_kernel,
        out_shape=jax.ShapeDtypeStruct((nr, out_w), dtype),
        grid_spec=pltpu.PrefetchScalarGridSpec(
            num_scalar_prefetch=0,
            grid=(grid,),
            in_specs=[
                pl.BlockSpec((tr, in_w), lambda i: (i, 0)),
                pl.BlockSpec((tr, in_w), lambda i: (i, 0)),
                pl.BlockSpec((in_w, out_w), lambda i: (0, 0)),
                pl.BlockSpec((in_w, out_w), lambda i: (0, 0)),
                pl.BlockSpec((1, out_w), lambda i: (0, 0)),
            ],
            out_specs=pl.BlockSpec((tr, out_w), lambda i: (i, 0)),
        ),
        compiler_params=pltpu.CompilerParams(
            dimension_semantics=("parallel",),
            vmem_limit_bytes=48 * 1024 * 1024),
        cost_estimate=cost,
    )(n2, c2, wn_big, wc_big, b_big)

    return out.reshape(np_rows, STRUCT_EMBED)[:N].reshape(B, F, STRUCT_EMBED)


def reference(params, face_normals, triangles, triangles_center):
    """Pure-JAX reference mirroring the PyTorch forward exactly (unfused)."""
    corner_vectors = triangles - triangles_center[:, :, None, :]
    cv0, cv1, cv2 = (corner_vectors[:, :, k, :] for k in range(3))
    lin = lambda x, w, b: x @ w + b[0]
    cv0e = lin(jnp.concatenate([cv0, cv1], -1), params["w_fk"], params["b_fk"])
    cv1e = lin(jnp.concatenate([cv1, cv2], -1), params["w_fk"], params["b_fk"])
    cv2e = lin(jnp.concatenate([cv2, cv0], -1), params["w_fk"], params["b_fk"])
    cv_embed = (cv0e + cv1e + cv2e) / 3.0
    nemb = lin(face_normals, params["w_nl"], params["b_nl"])
    struct = jnp.concatenate([nemb, cv_embed], axis=-1)
    return lin(struct, params["w_em"], params["b_em"])


if __name__ == "__main__":
    key = jax.random.PRNGKey(0)
    kp, k1, k2, k3 = jax.random.split(key, 4)

    params = init_params(kp)

    B, F = 2, 8
    face_normals = jax.random.normal(k1, (B, F, 3), jnp.float32)
    triangles = jax.random.normal(k2, (B, F, 3, 3), jnp.float32)
    # Center near (but not exactly at) the corner mean so the corner-vector
    # branch contributes nontrivially to the output.
    triangles_center = (jnp.mean(triangles, axis=2)
                        + 0.25 * jax.random.normal(k3, (B, F, 3), jnp.float32))

    out = mesh_structural_embedding(params, face_normals, triangles,
                                    triangles_center)
    out = jax.block_until_ready(out)

    ref = reference(params, face_normals, triangles, triangles_center)
    assert out.shape == (B, F, STRUCT_EMBED), out.shape
    max_err = float(jnp.max(jnp.abs(out - ref)))
    assert jnp.allclose(out, ref, atol=1e-4, rtol=1e-4), max_err

    print("KERNEL_OK")
</pallas_src>

<mosaic_0001>
module attributes {stable_mosaic.version = 11 : i64} {
  func.func @mesh_embed_kernel(%arg0: i32, %arg1: memref<8x24xf32, #tpu.memory_space<vmem>>, %arg2: memref<8x24xf32, #tpu.memory_space<vmem>>, %arg3: memref<24x512xf32, #tpu.memory_space<vmem>>, %arg4: memref<24x512xf32, #tpu.memory_space<vmem>>, %arg5: memref<1x512xf32, #tpu.memory_space<vmem>>, %arg6: memref<8x512xf32, #tpu.memory_space<vmem>>) attributes {dimension_semantics = [#tpu.dimension_semantics<parallel>], iteration_bounds = array<i64: 1>, scalar_prefetch = 0 : i64, scratch_operands = 0 : i64, tpu.core_type = #tpu.core_type<tc>, window_params = [{transform_indices = @transform_0, window_bounds = array<i64: 8, 24>}, {transform_indices = @transform_1, window_bounds = array<i64: 8, 24>}, {pipeline_mode = #tpu.pipeline_mode<synchronous>, transform_indices = @transform_2, window_bounds = array<i64: 24, 512>}, {pipeline_mode = #tpu.pipeline_mode<synchronous>, transform_indices = @transform_3, window_bounds = array<i64: 24, 512>}, {pipeline_mode = #tpu.pipeline_mode<synchronous>, transform_indices = @transform_4, window_bounds = array<i64: 1, 512>}, {transform_indices = @transform_5, window_bounds = array<i64: 8, 512>}]} {
    %c0 = arith.constant 0 : index
    %c0_0 = arith.constant 0 : index
    %0 = vector.load %arg1[%c0, %c0_0] : memref<8x24xf32, #tpu.memory_space<vmem>>, vector<8x24xf32>
    %c0_1 = arith.constant 0 : index
    %c0_2 = arith.constant 0 : index
    %1 = vector.load %arg3[%c0_1, %c0_2] : memref<24x512xf32, #tpu.memory_space<vmem>>, vector<24x512xf32>
    %cst = arith.constant dense<0.000000e+00> : vector<8x512xf32>
    %2 = tpu.matmul %0, %1, %cst {dimension_numbers = #tpu.dot_dimension_numbers<[1], [0], [0], [1], [0, 0, 1, 1], [], []>} : vector<8x24xf32>, vector<24x512xf32>, vector<8x512xf32> -> vector<8x512xf32>
    %c0_3 = arith.constant 0 : index
    %c0_4 = arith.constant 0 : index
    %3 = vector.load %arg2[%c0_3, %c0_4] : memref<8x24xf32, #tpu.memory_space<vmem>>, vector<8x24xf32>
    %c0_5 = arith.constant 0 : index
    %c0_6 = arith.constant 0 : index
    %4 = vector.load %arg4[%c0_5, %c0_6] : memref<24x512xf32, #tpu.memory_space<vmem>>, vector<24x512xf32>
    %cst_7 = arith.constant dense<0.000000e+00> : vector<8x512xf32>
    %5 = tpu.matmul %3, %4, %cst_7 {dimension_numbers = #tpu.dot_dimension_numbers<[1], [0], [0], [1], [0, 0, 1, 1], [], []>} : vector<8x24xf32>, vector<24x512xf32>, vector<8x512xf32> -> vector<8x512xf32>
    %6 = arith.addf %2, %5 : vector<8x512xf32>
    %c0_8 = arith.constant 0 : index
    %c0_9 = arith.constant 0 : index
    %7 = vector.load %arg5[%c0_8, %c0_9] : memref<1x512xf32, #tpu.memory_space<vmem>>, vector<1x512xf32>
    %8 = vector.broadcast %7 : vector<1x512xf32> to vector<8x512xf32>
    %9 = arith.addf %6, %8 : vector<8x512xf32>
    %c0_10 = arith.constant 0 : index
    %c0_11 = arith.constant 0 : index
    %10 = vector.load %arg6[%c0_10, %c0_11] : memref<8x512xf32, #tpu.memory_space<vmem>>, vector<8x512xf32>
    tpu.vector_store %arg6[%c0_10, %c0_11], %9 {strides = array<i32>} : memref<8x512xf32, #tpu.memory_space<vmem>>, vector<8x512xf32>,
    return
  }
  func.func @transform_0(%arg0: i32) -> (i32, i32) {
    %c0_i32 = arith.constant 0 : i32
    %c0_i32_0 = arith.constant 0 : i32
    return %arg0, %c0_i32 : i32, i32
  }
  func.func @transform_1(%arg0: i32) -> (i32, i32) {
    %c0_i32 = arith.constant 0 : i32
    %c0_i32_0 = arith.constant 0 : i32
    return %arg0, %c0_i32 : i32, i32
  }
  func.func @transform_2(%arg0: i32) -> (i32, i32) {
    %c0_i32 = arith.constant 0 : i32
    %c0_i32_0 = arith.constant 0 : i32
    %c0_i32_1 = arith.constant 0 : i32
    return %c0_i32, %c0_i32_0 : i32, i32
  }
  func.func @transform_3(%arg0: i32) -> (i32, i32) {
    %c0_i32 = arith.constant 0 : i32
    %c0_i32_0 = arith.constant 0 : i32
    %c0_i32_1 = arith.constant 0 : i32
    return %c0_i32, %c0_i32_0 : i32, i32
  }
  func.func @transform_4(%arg0: i32) -> (i32, i32) {
    %c0_i32 = arith.constant 0 : i32
    %c0_i32_0 = arith.constant 0 : i32
    %c0_i32_1 = arith.constant 0 : i32
    return %c0_i32, %c0_i32_0 : i32, i32
  }
  func.func @transform_5(%arg0: i32) -> (i32, i32) {
    %c0_i32 = arith.constant 0 : i32
    %c0_i32_0 = arith.constant 0 : i32
    return %arg0, %c0_i32 : i32, i32
  }
}

</mosaic_0001>

<bundles_post_ra>
// kernel: mesh_structural_embedding.1
= control target key start
LH: loop header
LB: loop body
LE: loop exit
PB: predicated region body
PF: predicated region fallthrough
CT: control target
= control target key end

     0   :  { %vm46_vm0 = vcmask 195584   ;;  %s374_s3 = inlined_call_operand.vmem [shape: f32[24,512], index: 3, kind: input, shape index: {}]   ;;  %s375_s1 = inlined_call_operand.vmem [shape: f32[8,24], index: 1, kind: input, shape index: {}]   ;;  %s376_s2 = inlined_call_operand.vmem [shape: f32[24,512], index: 2, kind: input, shape index: {}]   ;;  %s377_s0 = inlined_call_operand.vmem [shape: f32[8,24], index: 0, kind: input, shape index: {}]   ;;  %s378_s4 = inlined_call_operand.vmem [shape: f32[1,512], index: 4, kind: input, shape index: {}]   ;;  %s379_s5 = inlined_call_operand.vmem [shape: f32[8,512], index: 5, kind: output, shape index: {}]  }
   0x1   :  { %v42_v0 = vld [vmem:[%s374_s3 + $0x40] sm:$0xff]  ;;  %v43_v1 = vld [vmem:[%s374_s3 + $0x48] sm:$0xff]  ;;  %v44_v2 = vld [vmem:[%s374_s3 + $0x50] sm:$0xff] }
   0x2   :  { %63 = vmatpush.msra.mxu0 %v42_v0  ;;  %83 = vmatpush.msra.mxu1 %v43_v1  ;;  %v45_v3 = vld [vmem:[%s374_s3 + $0x58] sm:$0xff]  ;;  %v38_v4 = vld [vmem:[%s374_s3 + $0x20] sm:$0xff]  ;;  %v39_v5 = vld [vmem:[%s374_s3 + $0x28] sm:$0xff] }
   0x3   :  { %103 = vmatpush.msra.mxu2 %v44_v2  ;;  %123 = vmatpush.msra.mxu3 %v45_v3  ;;  %v40_v6 = vld [vmem:[%s374_s3 + $0x30] sm:$0xff]  ;;  %v41_v7 = vld [vmem:[%s374_s3 + $0x38] sm:$0xff]  ;;  %v34_v8 = vld [vmem:[%s374_s3] sm:$0xff] }
   0x4   :  { %64 = vmatpush.msra.mxu0 %v38_v4  ;;  %84 = vmatpush.msra.mxu1 %v39_v5  ;;  %v35_v9 = vld [vmem:[%s374_s3 + $0x8] sm:$0xff]  ;;  %v36_v10 = vld [vmem:[%s374_s3 + $0x10] sm:$0xff]  ;;  %v37_v11 = vld [vmem:[%s374_s3 + $0x18] sm:$0xff] }
   0x5   :  { %104 = vmatpush.msra.mxu2 %v40_v6  ;;  %124 = vmatpush.msra.mxu3 %v41_v7  ;;  %v33_v12 = vld [vmem:[%s375_s1] sm:$0xff]  ;;  %v31_v13 = vld [vmem:[%s376_s2 + $0x50] sm:$0xff]  ;;  %v32_v14 = vld [vmem:[%s376_s2 + $0x58] sm:$0xff] }
   0x6   :  { %65 = vmatpush.msra.mxu0 %v34_v8  ;;  %85 = vmatpush.msra.mxu1 %v35_v9  ;;  %v29_v15 = vld [vmem:[%s376_s2 + $0x40] sm:$0xff]  ;;  %v30_v16 = vld [vmem:[%s376_s2 + $0x48] sm:$0xff]  ;;  %v27_v17 = vld [vmem:[%s376_s2 + $0x30] sm:$0xff] }
   0x7   :  { %105 = vmatpush.msra.mxu2 %v36_v10  ;;  %125 = vmatpush.msra.mxu3 %v37_v11  ;;  %v28_v18 = vld [vmem:[%s376_s2 + $0x38] sm:$0xff]  ;;  %v25_v19 = vld [vmem:[%s376_s2 + $0x20] sm:$0xff]  ;;  %v26_v20 = vld [vmem:[%s376_s2 + $0x28] sm:$0xff] }
   0x8   :  { %235 = vmatmul.msk.f32.vlgmr.msra.gmra.mxu0 %vm46_vm0, %v33_v12  ;;  %236 = vmatmul.msk.f32.vlgmr.msra.gmra.mxu1 %vm46_vm0, %v33_v12  ;;  %v23_v21 = vld [vmem:[%s376_s2 + $0x10] sm:$0xff]  ;;  %v24_v22 = vld [vmem:[%s376_s2 + $0x18] sm:$0xff]  ;;  %v21_v23 = vld [vmem:[%s376_s2] sm:$0xff] }
   0x9   :  { %237 = vmatmul.msk.f32.vlgmr.msra.gmra.mxu2 %vm46_vm0, %v33_v12  ;;  %238 = vmatmul.msk.f32.vlgmr.msra.gmra.mxu3 %vm46_vm0, %v33_v12  ;;  %v22_v24 = vld [vmem:[%s376_s2 + $0x8] sm:$0xff]  ;;  %v20_v25 = vld [vmem:[%s377_s0] sm:$0xff] }
   0xa   :  { %186 = vmatpush.msrb.mxu2 %v31_v13  ;;  %206 = vmatpush.msrb.mxu3 %v32_v14  ;;  %v213_v28 = vld [vmem:[%s378_s4] sm:$0xf] }
   0xb   :  { %146 = vmatpush.msrb.mxu0 %v29_v15  ;;  %166 = vmatpush.msrb.mxu1 %v30_v16  ;;  %v215_v31 = vperm.slane %v213_v28, 0  ;;  %v216_v32 = vperm.slane %v213_v28, 1  ;;  %v217_v39 = vperm.slane %v213_v28, 2  ;;  %v218_v40 = vperm.slane %v213_v28, 3 }
   0xc   :  { %187 = vmatpush.msrb.mxu2 %v27_v17  ;;  %207 = vmatpush.msrb.mxu3 %v28_v18 }
   0xd   :  { %147 = vmatpush.msrb.mxu0 %v25_v19  ;;  %167 = vmatpush.msrb.mxu1 %v26_v20 }
   0xe   :  { %188 = vmatpush.msrb.mxu2 %v23_v21  ;;  %208 = vmatpush.msrb.mxu3 %v24_v22 }
   0xf   :  { %148 = vmatpush.msrb.mxu0 %v21_v23  ;;  %168 = vmatpush.msrb.mxu1 %v22_v24 }
  0x10   :  { %239 = vmatmul.msk.f32.vlgmr.msrb.gmra.mxu0 %vm46_vm0, %v20_v25  ;;  %240 = vmatmul.msk.f32.vlgmr.msrb.gmra.mxu1 %vm46_vm0, %v20_v25 }
  0x11   :  { %241 = vmatmul.msk.f32.vlgmr.msrb.gmra.mxu2 %vm46_vm0, %v20_v25  ;;  %242 = vmatmul.msk.f32.vlgmr.msrb.gmra.mxu3 %vm46_vm0, %v20_v25 }
  0x85   :  { %v67_v26 = vpop.f32.mrf.mxu0  ;;  %v87_v27 = vpop.f32.mrf.mxu1 }
  0x8c   :  { %v107_v29 = vpop.f32.mrf.mxu2  ;;  %v127_v30 = vpop.f32.mrf.mxu3 }
  0x8d   :  { %v150_v33 = vpop.f32.mrf.mxu0  ;;  %v170_v34 = vpop.f32.mrf.mxu1 }
  0x8e   :  { %v151_v35 = vadd.f32 %v150_v33, %v67_v26  ;;  %v171_v36 = vadd.f32 %v170_v34, %v87_v27 }
  0x90   :  { %v223_v37 = vadd.f32 %v215_v31, %v151_v35  ;;  %v224_v38 = vadd.f32 %v216_v32, %v171_v36 }
  0x92   :  { %227 = vst [vmem:[%s379_s5] sm:$0xff] %v223_v37 }
  0x93   :  { %228 = vst [vmem:[%s379_s5 + $0x8] sm:$0xff] %v224_v38 }
  0x94   :  { %v190_v41 = vpop.f32.mrf.mxu2  ;;  %v210_v42 = vpop.f32.mrf.mxu3 }
  0x95   :  { %v191_v43 = vadd.f32 %v190_v41, %v107_v29  ;;  %v211_v44 = vadd.f32 %v210_v42, %v127_v30 }
  0x97   :  { %v225_v45 = vadd.f32 %v217_v39, %v191_v43  ;;  %v226_v46 = vadd.f32 %v218_v40, %v211_v44 }
  0x99   :  { %229 = vst [vmem:[%s379_s5 + $0x10] sm:$0xff] %v225_v45 }
  0x9a   :  { %230 = vst [vmem:[%s379_s5 + $0x18] sm:$0xff] %v226_v46 }

</bundles_post_ra>
